<compile_context>
chip_gen: v7x
topology: tpu7x:2x2x1
jax: 0.10.0
libtpu: 0.0.40
codegen_flags: <defaults>
</compile_context>

<pallas_src>
import math

import jax
import jax.numpy as jnp
from jax import lax
from jax.experimental import pallas as pl
from jax.experimental.pallas import tpu as pltpu


def _round_up(x, m):
    return ((x + m - 1) // m) * m


def _cdiv(a, b):
    return (a + b - 1) // b


def _min_sublane(dtype):
    # Packed-tile sublane minimum: 8 for 4-byte, 16 for 2-byte, 32 for 1-byte dtypes.
    return {4: 8, 2: 16, 1: 32}.get(jnp.dtype(dtype).itemsize, 8)


# ---------------------------------------------------------------------------
# Kernels
# ---------------------------------------------------------------------------
def _linear_kernel_out_acc(x_ref, w_ref, o_ref):
    # f32 output: accumulate directly into the output block (resident across K).
    @pl.when(pl.program_id(2) == 0)
    def _():
        o_ref[...] = jnp.zeros_like(o_ref)

    o_ref[...] += jnp.dot(
        x_ref[...], w_ref[...], preferred_element_type=jnp.float32
    )


def _linear_kernel_scratch_acc(x_ref, w_ref, o_ref, acc_ref):
    # Narrow output dtype: accumulate in f32 VMEM scratch, cast once at the end.
    @pl.when(pl.program_id(2) == 0)
    def _():
        acc_ref[...] = jnp.zeros_like(acc_ref)

    acc_ref[...] += jnp.dot(
        x_ref[...], w_ref[...], preferred_element_type=jnp.float32
    )

    @pl.when(pl.program_id(2) == pl.num_programs(2) - 1)
    def _():
        o_ref[...] = acc_ref[...].astype(o_ref.dtype)


# ---------------------------------------------------------------------------
# Wrapper
# ---------------------------------------------------------------------------
def prepare_linear_weight(weight):
    """One-time transform of a torch-layout (out_features, in_features) weight
    into the kernel layout (Kp, out_features): transposed so the contraction
    dim leads (MXU RHS, lane-dense N output) and K zero-padded to a multiple of
    128 so K-tiling never reads garbage.  Call ONCE at parameter init/load
    time, not per forward."""
    n_out, k_in = weight.shape
    kp = _round_up(k_in, 128)
    w_t = weight.T
    if kp != k_in:
        w_t = jnp.pad(w_t, ((0, kp - k_in), (0, 0)))
    return w_t


def linear_forward(
    x,
    weight,
    *,
    weight_is_prepared=False,
    compute_dtype=None,
    tm=512,
    tn=512,
    tk=512,
    input_buffer_count=None,
):
    """y = x @ weight.T (torch.nn.Linear forward, no bias).

    x: [..., in_features]
    weight: (out_features, in_features)  if weight_is_prepared=False
            (Kp, out_features)           if weight_is_prepared=True
               (see prepare_linear_weight)
    compute_dtype: optional narrow compute dtype (e.g. jnp.bfloat16); MXU
                   accumulation stays f32.
    input_buffer_count: optional deeper input pipelining (e.g. 3 on v5e).
    """
    K = x.shape[-1]
    if weight_is_prepared:
        w_t = weight
        Kp, N = w_t.shape
        assert Kp % 128 == 0 and Kp >= K
    else:
        # Fallback path: costs an extra HBM pass over the weight per call.
        # Prefer prepare_linear_weight() once outside the hot path.
        w_t = prepare_linear_weight(weight)
        Kp, N = w_t.shape

    lead_shape = x.shape[:-1]
    M = math.prod(lead_shape) if lead_shape else 1
    out_dtype = x.dtype

    x2d = x.reshape(M, K)
    if compute_dtype is not None:
        x2d = x2d.astype(compute_dtype)
        if w_t.dtype != jnp.dtype(compute_dtype):
            # Ideally the prepared weight is stored in compute_dtype already.
            w_t = w_t.astype(compute_dtype)
    if Kp != K:
        # Zero-pad K only (numerically required).  M/N ragged edges are handled
        # by Pallas masked writeback; no padded copy of x, no output slice.
        x2d = jnp.pad(x2d, ((0, 0), (0, Kp - K)))

    sub = _min_sublane(x2d.dtype)
    tm = max(sub, (tm // sub) * sub)
    tn = max(128, (tn // 128) * 128)
    tk = max(128, (tk // 128) * 128)

    tm_eff = min(tm, _round_up(M, sub))
    tn_eff = min(tn, _round_up(N, 128))
    tk_eff = min(tk, Kp)
    if Kp % tk_eff != 0:
        # Largest 128-multiple divisor of Kp that fits under tk (128 always works).
        tk_eff = 128
        for cand in range(min(tk, Kp), 127, -128):
            if Kp % cand == 0:
                tk_eff = cand
                break

    grid_m = _cdiv(M, tm_eff)
    grid_n = _cdiv(N, tn_eff)
    # v7x has 2 TensorCores: ensure the "parallel" axes expose >= 2 blocks for
    # small-M (decode-style) problems so both cores get work.
    if grid_m * grid_n == 1 and N >= 256:
        tn_eff = _round_up(_cdiv(N, 2), 128)
        grid_n = _cdiv(N, tn_eff)
    grid = (grid_m, grid_n, Kp // tk_eff)

    spec_kwargs = {}
    if input_buffer_count is not None:
        spec_kwargs = dict(pipeline_mode=pl.Buffered(input_buffer_count))
    in_specs = [
        pl.BlockSpec((tm_eff, tk_eff), lambda i, j, k: (i, k), **spec_kwargs),
        pl.BlockSpec((tk_eff, tn_eff), lambda i, j, k: (k, j), **spec_kwargs),
    ]
    out_spec = pl.BlockSpec((tm_eff, tn_eff), lambda i, j, k: (i, j))

    x_item = jnp.dtype(x2d.dtype).itemsize
    w_item = jnp.dtype(w_t.dtype).itemsize
    o_item = jnp.dtype(out_dtype).itemsize
    cost = pl.CostEstimate(
        flops=2 * M * Kp * N,
        transcendentals=0,
        # Inputs re-stream once per opposing-output tile.
        bytes_accessed=(M * Kp * grid[1]) * x_item
        + (Kp * N * grid[0]) * w_item
        + M * N * o_item,
    )

    if jnp.dtype(out_dtype) == jnp.dtype(jnp.float32):
        kernel = _linear_kernel_out_acc
        scratch_shapes = []
    else:
        kernel = _linear_kernel_scratch_acc
        scratch_shapes = [pltpu.VMEM((tm_eff, tn_eff), jnp.float32)]

    out2d = pl.pallas_call(
        kernel,
        out_shape=jax.ShapeDtypeStruct((M, N), out_dtype),
        grid_spec=pltpu.PrefetchScalarGridSpec(
            num_scalar_prefetch=0,
            grid=grid,
            in_specs=in_specs,
            out_specs=out_spec,
            scratch_shapes=scratch_shapes,
        ),
        compiler_params=pltpu.CompilerParams(
            dimension_semantics=("parallel", "parallel", "arbitrary"),
        ),
        cost_estimate=cost,
    )(x2d, w_t)

    return out2d.reshape(*lead_shape, N)


def init_linear_weight(key, in_features, out_features, dtype=jnp.float32):
    # Matches nn.init.trunc_normal_(mean=0, std=std, a=-3*std, b=3*std)
    std = math.sqrt(2.0 / (in_features + out_features))
    w = jax.random.truncated_normal(
        key, lower=-3.0, upper=3.0, shape=(out_features, in_features)
    ) * std
    return w.astype(dtype)


if __name__ == "__main__":
    key = jax.random.PRNGKey(0)
    k_x1, k_w1, k_x2, k_w2, k_x3, k_w3 = jax.random.split(key, 6)

    # --- Test 1: small single-block case (prepared weight, hoisted transform).
    batch, seq, in_f, out_f = 2, 8, 32, 64
    x1 = jax.random.normal(k_x1, (batch, seq, in_f), dtype=jnp.float32)
    w1 = init_linear_weight(k_w1, in_f, out_f)
    w1_prep = prepare_linear_weight(w1)           # once, outside the hot path
    y1 = jax.block_until_ready(
        linear_forward(x1, w1_prep, weight_is_prepared=True)
    )
    y1_ref = jnp.einsum("bsk,nk->bsn", x1, w1, precision=lax.Precision.HIGHEST)
    assert y1.shape == (batch, seq, out_f)
    assert jnp.allclose(y1, y1_ref, atol=1e-4, rtol=1e-4)

    # --- Test 2: ragged M/N/K (masked-edge path, no padded x / sliced output).
    b2, s2, k2, n2 = 3, 7, 48, 80
    x2 = jax.random.normal(k_x2, (b2, s2, k2), dtype=jnp.float32)
    w2 = init_linear_weight(k_w2, k2, n2)
    y2 = jax.block_until_ready(linear_forward(x2, w2))   # un-prepared fallback path
    y2_ref = jnp.einsum("bsk,nk->bsn", x2, w2, precision=lax.Precision.HIGHEST)
    assert y2.shape == (b2, s2, n2)
    assert jnp.allclose(y2, y2_ref, atol=1e-4, rtol=1e-4)

    # --- Test 3: multi-tile grid with K accumulation (256-tiles -> grid (1,2,2)).
    b3, s3, k3, n3 = 4, 64, 512, 512
    x3 = jax.random.normal(k_x3, (b3, s3, k3), dtype=jnp.float32)
    w3 = init_linear_weight(k_w3, k3, n3)
    w3_prep = prepare_linear_weight(w3)
    y3 = jax.block_until_ready(
        linear_forward(x3, w3_prep, weight_is_prepared=True, tm=256, tn=256, tk=256)
    )
    y3_ref = jnp.einsum("bsk,nk->bsn", x3, w3, precision=lax.Precision.HIGHEST)
    assert y3.shape == (b3, s3, n3)
    assert jnp.allclose(y3, y3_ref, atol=1e-3, rtol=1e-3)

    # --- Test 4: bf16 compute path (f32 accumulation, f32 output).
    y4 = jax.block_until_ready(
        linear_forward(
            x3, w3_prep, weight_is_prepared=True, compute_dtype=jnp.bfloat16,
            tm=256, tn=256, tk=256,
        )
    )
    assert y4.shape == (b3, s3, n3)
    assert jnp.allclose(y4, y3_ref, atol=5e-2, rtol=5e-2)

    print("KERNEL_OK")
</pallas_src>

<mosaic_0001>
module attributes {stable_mosaic.version = 11 : i64} {
  func.func @_linear_kernel_out_acc(%arg0: i32, %arg1: i32, %arg2: i32, %arg3: memref<16x128xf32, #tpu.memory_space<vmem>>, %arg4: memref<128x128xf32, #tpu.memory_space<vmem>>, %arg5: memref<16x128xf32, #tpu.memory_space<vmem>>) attributes {dimension_semantics = [#tpu.dimension_semantics<parallel>, #tpu.dimension_semantics<parallel>, #tpu.dimension_semantics<arbitrary>], iteration_bounds = array<i64: 1, 1, 1>, scalar_prefetch = 0 : i64, scratch_operands = 0 : i64, tpu.core_type = #tpu.core_type<tc>, window_params = [{transform_indices = @transform_0, window_bounds = array<i64: 16, 128>}, {transform_indices = @transform_1, window_bounds = array<i64: 128, 128>}, {transform_indices = @transform_2, window_bounds = array<i64: 16, 128>}]} {
    %c0_i32 = arith.constant 0 : i32
    %0 = arith.cmpi eq, %arg2, %c0_i32 : i32
    %1 = arith.extui %0 : i1 to i32
    %c0_i32_0 = arith.constant 0 : i32
    %2 = arith.cmpi ne, %1, %c0_i32_0 : i32
    scf.if %2 {
      %cst_8 = arith.constant 0.000000e+00 : f32
      %9 = vector.broadcast %cst_8 : f32 to vector<16x128xf32>
      %c0_9 = arith.constant 0 : index
      %c0_10 = arith.constant 0 : index
      %10 = vector.load %arg5[%c0_9, %c0_10] : memref<16x128xf32, #tpu.memory_space<vmem>>, vector<16x128xf32>
      tpu.vector_store %arg5[%c0_9, %c0_10], %9 {strides = array<i32>} : memref<16x128xf32, #tpu.memory_space<vmem>>, vector<16x128xf32>,
    } else {
    }
    %c0 = arith.constant 0 : index
    %c0_1 = arith.constant 0 : index
    %3 = vector.load %arg5[%c0, %c0_1] : memref<16x128xf32, #tpu.memory_space<vmem>>, vector<16x128xf32>
    %c0_2 = arith.constant 0 : index
    %c0_3 = arith.constant 0 : index
    %4 = vector.load %arg3[%c0_2, %c0_3] : memref<16x128xf32, #tpu.memory_space<vmem>>, vector<16x128xf32>
    %c0_4 = arith.constant 0 : index
    %c0_5 = arith.constant 0 : index
    %5 = vector.load %arg4[%c0_4, %c0_5] : memref<128x128xf32, #tpu.memory_space<vmem>>, vector<128x128xf32>
    %cst = arith.constant dense<0.000000e+00> : vector<16x128xf32>
    %6 = tpu.matmul %4, %5, %cst {dimension_numbers = #tpu.dot_dimension_numbers<[1], [0], [0], [1], [0, 0, 1, 1], [], []>} : vector<16x128xf32>, vector<128x128xf32>, vector<16x128xf32> -> vector<16x128xf32>
    %7 = arith.addf %3, %6 : vector<16x128xf32>
    %c0_6 = arith.constant 0 : index
    %c0_7 = arith.constant 0 : index
    %8 = vector.load %arg5[%c0_6, %c0_7] : memref<16x128xf32, #tpu.memory_space<vmem>>, vector<16x128xf32>
    tpu.vector_store %arg5[%c0_6, %c0_7], %7 {strides = array<i32>} : memref<16x128xf32, #tpu.memory_space<vmem>>, vector<16x128xf32>,
    return
  }
  func.func @transform_0(%arg0: i32, %arg1: i32, %arg2: i32) -> (i32, i32) {
    %c0_i32 = arith.constant 0 : i32
    return %arg0, %arg2 : i32, i32
  }
  func.func @transform_1(%arg0: i32, %arg1: i32, %arg2: i32) -> (i32, i32) {
    %c0_i32 = arith.constant 0 : i32
    return %arg2, %arg1 : i32, i32
  }
  func.func @transform_2(%arg0: i32, %arg1: i32, %arg2: i32) -> (i32, i32) {
    %c0_i32 = arith.constant 0 : i32
    return %arg0, %arg1 : i32, i32
  }
}

</mosaic_0001>

<bundles_post_ra>
// kernel: tpu_custom_call.1
= control target key start
LH: loop header
LB: loop body
LE: loop exit
PB: predicated region body
PF: predicated region fallthrough
CT: control target
= control target key end

     0   :  { %s330_s0 = inlined_call_operand.vmem [shape: f32[16,128], index: 0, kind: input, shape index: {}]   ;;  %s331_s1 = inlined_call_operand.vmem [shape: f32[128,64], index: 1, kind: input, shape index: {}]   ;;  %s332_s2 = inlined_call_operand.hbm [shape: f32[16,64], index: 2, kind: output, shape index: {}]  }
   0x1   :  { %v22_v0 = vld [vmem:[%s331_s1] sm:$0xff]  ;;  %v23_v1 = vld [vmem:[%s331_s1 + $0x8] sm:$0xff]  ;;  %v24_v2 = vld [vmem:[%s331_s1 + $0x10] sm:$0xff] }
   0x2   :  { %v186_v3 = vpack.c.bf16 %v23_v1, %v22_v0  ;;  %v25_v4 = vld [vmem:[%s331_s1 + $0x18] sm:$0xff]  ;;  %v26_v6 = vld [vmem:[%s331_s1 + $0x20] sm:$0xff]  ;;  %v27_v7 = vld [vmem:[%s331_s1 + $0x28] sm:$0xff] }
   0x3   :  { %v190_v5 = vpack.c.bf16 %v25_v4, %v24_v2  ;;  %v194_v8 = vpack.c.bf16 %v27_v7, %v26_v6  ;;  %v20_v9 = vld [vmem:[%s330_s0] sm:$0xff]  ;;  %v28_v10 = vld [vmem:[%s331_s1 + $0x30] sm:$0xff]  ;;  %v29_v11 = vld [vmem:[%s331_s1 + $0x38] sm:$0xff] }
   0x4   :  { %187 = vmatprep.subr.bf16.mxu0 %v186_v3  ;;  %183 = vmatprep.mubr.f32.mxu0 %v20_v9 }
   0x5   :  { %189 = vmatpush3.bf16.msra.mxu0 %v186_v3 }
   0x6   :  { %191 = vmatprep.subr.bf16.mxu0 %v190_v5 }
   0x7   :  { %7 = vsyncpa [#allocation3], 0  ;;  %v198_v12 = vpack.c.bf16 %v29_v11, %v28_v10  ;;  %v30_v13 = vld [vmem:[%s331_s1 + $0x40] sm:$0xff]  ;;  %v31_v14 = vld [vmem:[%s331_s1 + $0x48] sm:$0xff]  ;;  %s246_s17 = smov [#allocation2]  }
   0x8   :  { %v202_v15 = vpack.c.bf16 %v31_v14, %v30_v13  ;;  %v32_v16 = vld [vmem:[%s331_s1 + $0x50] sm:$0xff]  ;;  %v33_v17 = vld [vmem:[%s331_s1 + $0x58] sm:$0xff]  ;;  %v34_v19 = vld [vmem:[%s331_s1 + $0x60] sm:$0xff]  ;;  %s122_s18 = sshll.u32 %s246_s17, 4  ;;  %s123_s18 = int_to_ptr.vmem [resolvable:$true] %s122_s18 }
   0x9   :  { %193 = vmatpush3.bf16.msra.mxu0 %v190_v5  ;;  %v206_v18 = vpack.c.bf16 %v33_v17, %v32_v16  ;;  %v35_v20 = vld [vmem:[%s331_s1 + $0x68] sm:$0xff]  ;;  %v36_v22 = vld [vmem:[%s331_s1 + $0x70] sm:$0xff]  ;;  %v37_v23 = vld [vmem:[%s331_s1 + $0x78] sm:$0xff]  ;;  %s222_s19 = scalar_lea.vmem %s123_s18, 256  ;;  %p227_p1 = scmp.lt.s32.totalorder %s123_s18, %s123_s18 }
   0xa   :  { %195 = vmatprep.subr.bf16.mxu0 %v194_v8  ;;  %v210_v21 = vpack.c.bf16 %v35_v20, %v34_v19  ;;  %v214_v24 = vpack.c.bf16 %v37_v23, %v36_v22  ;;  %v21_v25 = vld [vmem:[%s330_s0 + $0x8] sm:$0xff]  ;;  %p223_p0 = scmp.ne.s32.totalorder %s123_s18, %s222_s19  ;;  %p228_p2 = scmp.lt.s32.totalorder %s222_s19, %s222_s19 }
   0xc   :  { %p229_p3 = por %p228_p2, %p227_p1 }
   0xd   :  { %197 = vmatpush3.bf16.msra.mxu0 %v194_v8 }
   0xe   :  { %199 = vmatprep.subr.bf16.mxu0 %v198_v12  ;;  %p230_p4 = pnand %p229_p3, %p223_p0 }
  0x11   :  { %201 = vmatpush3.bf16.msra.mxu0 %v198_v12 }
  0x12   :  { %203 = vmatprep.subr.bf16.mxu0 %v202_v15 }
  0x15   :  { %205 = vmatpush3.bf16.msra.mxu0 %v202_v15 }
  0x16   :  { %207 = vmatprep.subr.bf16.mxu0 %v206_v18 }
  0x19   :  { %209 = vmatpush3.bf16.msra.mxu0 %v206_v18 }
  0x1a   :  { %211 = vmatprep.subr.bf16.mxu0 %v210_v21 }
  0x1d   :  { %213 = vmatpush3.bf16.msra.mxu0 %v210_v21 }
  0x1e   :  { %215 = vmatprep.subr.bf16.mxu0 %v214_v24 }
  0x21   :  { %217 = vmatpush3.bf16.msra.mxu0 %v214_v24 }
  0x24   :  { %184 = vmatmul.mubr.f32.vlgmr.msra.gmra.mrb[0].mxu0 %v21_v25 }
  0xf7   :  { %v185_v26 = vpop.f32.mrb[0].mxu0 }
  0xf8   :  { %v104_v27 = vpop.f32.mrb[1].mxu0  ;;  %116 = vst [vmem:[#allocation2 + $0x8] sm:$0xff] %v185_v26 }
  0xf9   :  { %115 = vst [vmem:[#allocation2] sm:$0xff] %v104_v27 }
  0xfa   :  { %233 = shalt.err (!%p230_p4)
}
  0xfb   :  { %s234_s21 = scalar_lea.hbm %s332_s2, 256 }
  0xfc   :  { %p235_p5 = scmp.ne.s32.totalorder %s332_s2, %s234_s21  ;;  %p238_p6 = scmp.lt.u32.totalorder %s234_s21, %s332_s2 }
  0xfe   :  { %p240_p7 = pnand %p238_p6, %p235_p5 }
 0x100   :  { %243 = shalt.err (!%p240_p7)
}
 0x101   :  { %s247_s25 = smov 128   ;;  %s248_s26 = smov 8  }
 0x102   :  { %128 = dma.vmem_to_hbm [thread:$0]  %s123_s18, 256, %s332_s2, [#allocation3], %s247_s25, %s247_s25, %s248_s26  }
 0x103   :  { %244 = dma.done.wait [#allocation3], 256  }
 0x104   :  { %245 = vsyncadd [#allocation3], 4294967040 }
 0x105   :  { %132 = vsyncpa [#allocation3], 1 }

</bundles_post_ra>
